<compile_context>
chip_gen: v7x
topology: tpu7x:2x2x1
jax: 0.10.0
libtpu: 0.0.40
codegen_flags: <defaults>
</compile_context>

<pallas_src>
import functools

import jax
import jax.numpy as jnp
from jax import lax
from jax.experimental import pallas as pl
from jax.experimental.pallas import tpu as pltpu


# --------------------------------------------------------------------------
# Kernel: one (TM, n) row-stripe -> per-block (max, sum-exp) partials.
# --------------------------------------------------------------------------
def _dv_partials_kernel(scores_ref, out_ref, *, n: int, mask_rows: bool,
                        exact_non_diag: bool):
    s = scores_ref[...].astype(jnp.float32)       # widen in-kernel, under DMA
    tm = scores_ref.shape[0]

    # Masking is only emitted when actually needed (trace-time flags); the
    # common full-block / subtract-diag path has zero per-element masking.
    if mask_rows or exact_non_diag:
        row_start = pl.program_id(0) * tm
        grow = lax.broadcasted_iota(jnp.int32, s.shape, 0) + row_start
    if exact_non_diag:
        # Exact -inf diagonal mask (bit-parity path; off by default).
        col = lax.broadcasted_iota(jnp.int32, s.shape, 1)
        s = jnp.where(col == grow, -jnp.inf, s)
    if mask_rows:
        # Only reached when n % TM != 0: mask padded rows of the last block.
        s = jnp.where(grow < n, s, -jnp.inf)

    m_loc = jnp.max(s)                            # local max
    se_loc = jnp.sum(jnp.exp(s - m_loc))          # local sum exp(x - m_loc)

    # Pack the 2 scalars into a lane-dense (8, 128) output vreg:
    #   lane 0 -> m_loc, lane 1 -> se_loc (broadcast along sublanes; the
    #   epilogue only reads row 0).  Single iota + two selects per grid step.
    lane = lax.broadcasted_iota(jnp.int32, (8, 128), 1)
    packed = jnp.where(lane == 0, m_loc, 0.0)
    packed = jnp.where(lane == 1, se_loc, packed)
    out_ref[...] = packed.astype(jnp.float32)


# --------------------------------------------------------------------------
# Block sizing: budget by the f32-widened footprint, keep >= 2 blocks for
# v7x's dual TensorCores, prefer TM | n so no row masking is emitted.
# --------------------------------------------------------------------------
def _vmem_budget_bytes() -> tuple[int, int]:
    """(per-step declared-usage budget, vmem_limit_bytes) per generation."""
    try:
        vmem = pltpu.get_tpu_info().vmem_capacity_bytes
    except Exception:  # pragma: no cover - be conservative if query fails
        vmem = 64 * 1024 * 1024
    if vmem >= 96 * 1024 * 1024:                  # v5e / v6e: 128 MiB VMEM
        return 40 * 1024 * 1024, 64 * 1024 * 1024
    return 20 * 1024 * 1024, 32 * 1024 * 1024     # v7x: 64 MiB physical VMEM


def _choose_block_rows(n: int, itemsize: int, budget_bytes: int) -> int:
    # Packed-sublane alignment: 8 rows for f32, 16 for bf16, 32 for int8.
    align = max(8, 32 // max(1, itemsize))
    # Per-step footprint: 2x double-buffered native input block plus ~3
    # full-stripe f32 temporaries (widened copy / exp intermediates).
    bytes_per_row = n * (2 * itemsize + 3 * 4)
    cap = budget_bytes // max(1, bytes_per_row)
    cap = min(cap, 1024)
    if n > align:
        # Keep at least 2 blocks so the "parallel" axis can use both v7x TCs.
        cap = min(cap, ((n + 1) // 2 // align) * align)
    cap = max(align, (cap // align) * align)
    if cap >= n:
        return n                                  # single block = full array dims
    # Prefer a TM that divides n exactly (statically drops all row masking),
    # as long as that doesn't shrink the block by more than ~2x.
    for tm in range(cap, max(align, cap // 2) - 1, -align):
        if n % tm == 0:
            return tm
    return cap


# --------------------------------------------------------------------------
# Wrapper: pallas_call + tiny JAX epilogue combining per-block partials.
# --------------------------------------------------------------------------
def dv_forward(scores: jax.Array, non_diag: bool = False,
               block_rows: int | None = None,
               exact_non_diag_mask: bool = False) -> jax.Array:
    """Pallas implementation of DV.forward. Returns a scalar float32."""
    n, n2 = scores.shape
    assert n == n2, "scores must be square (n, n)"

    budget, vmem_limit = _vmem_budget_bytes()
    tm = block_rows if block_rows is not None else _choose_block_rows(
        n, scores.dtype.itemsize, budget)
    tm = min(tm, n)
    assert tm == n or tm % 8 == 0, "block_rows must be a multiple of 8 or == n"
    nb = (n + tm - 1) // tm                       # number of row blocks
    mask_rows = (n % tm) != 0                     # static: only ragged case
    exact = bool(non_diag and exact_non_diag_mask)

    kernel = functools.partial(_dv_partials_kernel, n=n, mask_rows=mask_rows,
                               exact_non_diag=exact)
    partials = pl.pallas_call(
        kernel,
        out_shape=jax.ShapeDtypeStruct((nb * 8, 128), jnp.float32),
        grid=(nb,),
        # pipeline_mode=pl.Buffered(3) on the input would hide DMA jitter if
        # profiling ever shows exposed DMA with small blocks; default 2 is
        # sufficient at the block sizes chosen above.
        in_specs=[pl.BlockSpec((tm, n), lambda i: (i, 0))],
        out_specs=pl.BlockSpec((8, 128), lambda i: (i, 0)),
        compiler_params=pltpu.CompilerParams(
            dimension_semantics=("parallel",),     # shard blocks across TCs (v7x)
            vmem_limit_bytes=vmem_limit,
        ),
    )(scores)                                      # native dtype: no wrapper cast

    # ---------------- Epilogue (O(nb) + O(n) work) ----------------
    stats = partials.reshape(nb, 8, 128)[:, 0, :2]      # (nb, 2)
    m_loc = stats[:, 0]
    se_loc = stats[:, 1]
    m_glob = jnp.max(m_loc)
    sum_exp = jnp.sum(jnp.exp(m_loc - m_glob) * se_loc)

    diag = jnp.diagonal(scores).astype(jnp.float32)     # n-element gather
    diag_mean = jnp.mean(diag)

    if non_diag:
        k = n * n - n
        if not exact:
            # Subtract the diagonal's exp-contribution (stable: args <= 0).
            # Not bit-identical to the -inf-mask reference when the diagonal
            # dominates the off-diagonal by ~> 80 nats; use
            # exact_non_diag_mask=True for that regime.
            sum_exp = sum_exp - jnp.sum(jnp.exp(diag - m_glob))
    else:
        k = n * n
    lse = m_glob + jnp.log(sum_exp)
    lme = lse - jnp.log(jnp.float32(k))
    return -(diag_mean + lme)


# --------------------------------------------------------------------------
# Plain-JAX reference mirroring the PyTorch code.
# --------------------------------------------------------------------------
def _dv_reference(scores: jax.Array, non_diag: bool = False) -> jax.Array:
    s = scores.astype(jnp.float32)
    n = s.shape[0]
    diag_mean = jnp.mean(jnp.diag(s))
    if non_diag:
        masked = jnp.where(jnp.eye(n, dtype=bool), -jnp.inf, s)
        k = n * n - n
    else:
        masked = s
        k = n * n
    lme = jax.nn.logsumexp(masked.reshape(-1)) - jnp.log(jnp.float32(k))
    return -(diag_mean + lme)


if __name__ == "__main__":
    key = jax.random.PRNGKey(0)
    # (n, dtype, forced block_rows) — exercise: single/multi block, divisor
    # fast path (no masking), ragged last block (row mask), bf16 native
    # pass-through, and non-128-multiple lane widths.
    cases = [
        (16, jnp.float32, None),     # tm=8, 2 blocks, no masking
        (40, jnp.float32, 16),       # forced tm, ragged tail -> row mask
        (48, jnp.bfloat16, None),    # tm=16 divisor, bf16, no masking
        (272, jnp.bfloat16, None),   # tm=128, ragged tail, multi-block bf16
    ]
    for idx, (n, dtype, br) in enumerate(cases):
        k1 = jax.random.fold_in(key, idx)
        scores = jax.random.normal(k1, (n, n), dtype=jnp.float32).astype(dtype)
        for non_diag in (False, True):
            out = dv_forward(scores, non_diag=non_diag, block_rows=br)
            jax.block_until_ready(out)
            ref = _dv_reference(scores, non_diag=non_diag)
            assert jnp.allclose(out, ref, rtol=1e-4, atol=1e-4), (
                n, str(dtype), non_diag, float(out), float(ref))
    # Exact -inf-diagonal-mask kernel path (bit-parity option).
    scores = jax.random.normal(jax.random.fold_in(key, 99), (48, 48),
                               dtype=jnp.float32)
    out = dv_forward(scores, non_diag=True, exact_non_diag_mask=True)
    jax.block_until_ready(out)
    ref = _dv_reference(scores, non_diag=True)
    assert jnp.allclose(out, ref, rtol=1e-4, atol=1e-4), (float(out), float(ref))
    print("KERNEL_OK")
</pallas_src>

<mosaic_0001>
module attributes {stable_mosaic.version = 11 : i64} {
  func.func @_dv_partials_kernel(%arg0: i32, %arg1: memref<8x16xf32, #tpu.memory_space<vmem>>, %arg2: memref<8x128xf32, #tpu.memory_space<vmem>>) attributes {dimension_semantics = [#tpu.dimension_semantics<parallel>], iteration_bounds = array<i64: 2>, scalar_prefetch = 0 : i64, scratch_operands = 0 : i64, tpu.core_type = #tpu.core_type<tc>, window_params = [{transform_indices = @transform_0, window_bounds = array<i64: 8, 16>}, {transform_indices = @transform_1, window_bounds = array<i64: 8, 128>}]} {
    %c0 = arith.constant 0 : index
    %c0_0 = arith.constant 0 : index
    %0 = vector.load %arg1[%c0, %c0_0] : memref<8x16xf32, #tpu.memory_space<vmem>>, vector<8x16xf32>
    %1 = vector.shape_cast %0 : vector<8x16xf32> to vector<1x8x16xf32>
    %cst = arith.constant dense<0xFF800000> : vector<1xf32>
    %2 = vector.multi_reduction <maximumf>, %1, %cst [1, 2] : vector<1x8x16xf32> to vector<1xf32>
    %3 = vector.shape_cast %2 : vector<1xf32> to vector<1x1x1xf32>
    %4 = vector.extract %3[0, 0, 0] : f32 from vector<1x1x1xf32>
    %5 = vector.broadcast %4 : f32 to vector<8x16xf32>
    %6 = arith.subf %0, %5 : vector<8x16xf32>
    %7 = math.exp %6 : vector<8x16xf32>
    %8 = vector.shape_cast %7 : vector<8x16xf32> to vector<1x8x16xf32>
    %cst_1 = arith.constant dense<0.000000e+00> : vector<1xf32>
    %9 = vector.multi_reduction <add>, %8, %cst_1 [1, 2] : vector<1x8x16xf32> to vector<1xf32>
    %10 = vector.shape_cast %9 : vector<1xf32> to vector<1x1x1xf32>
    %11 = vector.extract %10[0, 0, 0] : f32 from vector<1x1x1xf32>
    %12 = tpu.iota {dimensions = array<i32: 1>} : vector<8x128xi32>
    %c0_i32 = arith.constant 0 : i32
    %13 = vector.broadcast %c0_i32 : i32 to vector<8x128xi32>
    %14 = arith.cmpi eq, %12, %13 : vector<8x128xi32>
    %cst_2 = arith.constant 0.000000e+00 : f32
    %15 = vector.broadcast %4 : f32 to vector<8x128xf32>
    %16 = vector.broadcast %cst_2 : f32 to vector<8x128xf32>
    %17 = arith.select %14, %15, %16 : vector<8x128xi1>, vector<8x128xf32>
    %c1_i32 = arith.constant 1 : i32
    %18 = vector.broadcast %c1_i32 : i32 to vector<8x128xi32>
    %19 = arith.cmpi eq, %12, %18 : vector<8x128xi32>
    %20 = vector.broadcast %11 : f32 to vector<8x128xf32>
    %21 = arith.select %19, %20, %17 : vector<8x128xi1>, vector<8x128xf32>
    %c0_3 = arith.constant 0 : index
    %c0_4 = arith.constant 0 : index
    %22 = vector.load %arg2[%c0_3, %c0_4] : memref<8x128xf32, #tpu.memory_space<vmem>>, vector<8x128xf32>
    tpu.vector_store %arg2[%c0_3, %c0_4], %21 {strides = array<i32>} : memref<8x128xf32, #tpu.memory_space<vmem>>, vector<8x128xf32>,
    return
  }
  func.func @transform_0(%arg0: i32) -> (i32, i32) {
    %c0_i32 = arith.constant 0 : i32
    %c0_i32_0 = arith.constant 0 : i32
    return %arg0, %c0_i32 : i32, i32
  }
  func.func @transform_1(%arg0: i32) -> (i32, i32) {
    %c0_i32 = arith.constant 0 : i32
    %c0_i32_0 = arith.constant 0 : i32
    return %arg0, %c0_i32 : i32, i32
  }
}

</mosaic_0001>

<bundles_post_ra>
// kernel: tpu_custom_call.1
= control target key start
LH: loop header
LB: loop body
LE: loop exit
PB: predicated region body
PF: predicated region fallthrough
CT: control target
= control target key end

     0   :  { %6 = vsyncpa [#allocation3], 0  ;;  %s591_s0 = inlined_call_operand.hbm [shape: f32[16,16], index: 0, kind: input, shape index: {}]   ;;  %s592_s1 = inlined_call_operand.hbm [shape: f32[16,128], index: 1, kind: output, shape index: {}]  }
   0x1   :  { %8 = vsyncpa [#allocation3 + $0x1], 0 }
   0x2   :  { %9 = vsyncpa [#allocation4], 0 }
   0x3   :  { %11 = vsyncpa [#allocation4 + $0x1], 0  ;;  %s424_s6 = smov 0   ;;  %s426_s7 = smov 0  }
   0x4   :  { %s428_s8 = smov 0   ;;  %s430_s9 = smov 0  }
   0x5 LB: > { %s445_s10 = sadd.s32 4294967295, %s410_s9   ;;  %s250_s11 = sadd.s32 4294967294, %s410_s9   ;;  %s410_s9 = sphi %s430_s9, %s607_s9   ;;  %s406_s8 = sphi %s428_s8, %s606_s8   ;;  %s402_s7 = sphi %s426_s7, %s605_s7   ;;  %s398_s6 = sphi %s424_s6, %s604_s6  }
   0x6   : > { %s449_s12 = sadd.s32 1, %s410_s9   ;;  %s24_s13 = sadd.s32 1, %s406_s8 }
   0x7   : > { %s21_s14 = ssub.s32 %s410_s9, %s449_s12  ;;  %p31_p0 = scmp.ne.s32.totalorder %s406_s8, %s402_s7 }
   0x8   : > { %p22_p1 = scmp.eq.s32.totalorder %s21_s14, 0  ;;  %p32_p2 = scmp.eq.s32.totalorder %s410_s9, 0 }
   0x9   : > { %p37_p3 = scmp.ne.s32.totalorder %s402_s7, %s398_s6  ;;  %p38_p4 = scmp.eq.s32.totalorder %s445_s10, 0 }
   0xa   : > { %s461_s15 = scalar_select %p22_p1, %s406_s8, %s24_s13  }
   0xb   : > { %p463_p5 = por %p32_p2, %p31_p0  ;;  %p467_p6 = por %p38_p4, %p37_p3 }
   0xc   : > { %p61_p7 = scmp.eq.s32.totalorder %s445_s10, 1  ;;  %p67_p8 = scmp.eq.s32.totalorder %s250_s11, 1 }
   0xd   : > { %p278_p10 = scmp.lt.s32.totalorder %s410_s9, 2  ;;  %s87_s20 = sand.u32 1, %s406_s8  }
   0xe   : > { %p474_p11 = por %p61_p7, %p31_p0  ;;  %p478_p12 = por %p67_p8, %p37_p3 }
   0xf   : > { %s254_s21 = sshll.u32 %s410_s9, 7  ;;  %s253_s22 = sshll.u32 %s87_s20, 3 }
  0x10   : > { %s596_s18 = scalar_select %p474_p11, 1, 0 }
  0x11   : > { %s597_s19 = scalar_select %p478_p12, 1, 0 }
  0x12   : > { %s487_s25 = scalar_lea.hbm %s591_s0, %s254_s21  ;;  %s91_s26 = scalar_lea.vmem [#allocation2], %s253_s22 }
  0x13   : > { %s98_s27 = sshll.u32 %s91_s26, 4  ;;  %p491_p13 = pnand %p278_p10, %p463_p5  ;;  %s495_s27 = int_to_ptr.vmem [resolvable:$true] %s98_s27 }
  0x14   : > { %s88_s29 = scalar_lea.sflag [#allocation3], %s87_s20  ;;  %s314_s30 = scalar_lea.hbm %s487_s25, 128 }
  0x15   : > { %p315_p2 = scmp.ne.s32.totalorder %s487_s25, %s314_s30  ;;  %p316_p3 = pneg %p491_p13 }
  0x16   : > { %s319_s4 = scalar_lea.hbm %s591_s0, 256  ;;  %p320_p5 = scmp.lt.u32.totalorder %s487_s25, %s591_s0 }
  0x17   : > { %p317_p4 = pnand %p316_p3, %p315_p2  ;;  %p321_p8 = scmp.lt.u32.totalorder %s319_s4, %s314_s30 }
  0x18   : > { %p323_p9 = scmp.lt.u32.totalorder %s314_s30, %s487_s25 }
  0x19   : > { %p318_p7 = pneg %p317_p4  ;;  %p322_p10 = por %p321_p8, %p320_p5 }
  0x1b   : > { %p324_p0 = por %p323_p9, %p322_p10 }
  0x1d   : > { %p325_p1 = pnand %p324_p0, %p318_p7 }
  0x1f   : > { %328 = shalt.err (!%p325_p1)
}
  0x20   : > { %s329_s13 = scalar_lea.vmem %s495_s27, 128  ;;  %s412_s14 = smov [#allocation2]  }
  0x21   : > { %p330_p2 = scmp.ne.s32.totalorder %s495_s27, %s329_s13  ;;  %s334_s16 = sshll.u32 %s412_s14, 4  ;;  %s335_s16 = int_to_ptr.vmem [resolvable:$false] %s334_s16 }
  0x22   : > { %s336_s20 = scalar_lea.vmem %s335_s16, 256  ;;  %p337_p11 = scmp.lt.s32.totalorder %s495_s27, %s335_s16 }
  0x23   : > { %p332_p4 = pnand %p330_p2, %p316_p3  ;;  %p338_p5 = scmp.lt.s32.totalorder %s336_s20, %s329_s13 }
  0x25   : > { %p333_p12 = pneg %p332_p4  ;;  %p339_p8 = por %p338_p5, %p337_p11 }
  0x27   : > { %p340_p9 = pnand %p339_p8, %p333_p12 }
  0x29   : > { %343 = shalt.err (!%p340_p9)
}
  0x2a   : > { %273 = dma.hbm_to_vmem [thread:$0]  (!%p491_p13), %s487_s25, 128, %s495_s27, %s88_s29  }
  0x2b   : > { %p599_p0 = scmp.lt.s32.totalorder %s410_s9, 3  ;;  %p600_p1 = scmp.ge.s32.totalorder %s410_s9, 1 }
  0x2d   : > { %p104_p3 = pnand %p600_p1, %p599_p0 }
  0x2e   : > { %s529_s21 = sand.u32 (!%p104_p3), 1, %s402_s7  }
  0x2f   : > { %107 = sbr.rel (%p104_p3) target bundleno = 498 (0x1f2), region = 24  ;;  %s256_s22 = sshll.u32 (!%p104_p3), %s529_s21, 3 }
  0x30   : > { %s110_s23 = scalar_lea.sflag (!%p104_p3), [#allocation3], %s529_s21  ;;  %s113_s24 = scalar_lea.vmem (!%p104_p3), [#allocation2], %s256_s22 }
  0x36   : > { %389 = dma.done.wait (%p467_p6), %s110_s23, 128  }
  0x37   : > { %391 = vsyncadd (%p467_p6), %s110_s23, 4294967168  ;;  %vm133_vm0 = vcmask 130048   ;;  %v132_v0 = vld [vmem:[%s113_s24] sm:$0xff]  ;;  %v158_v21 = vlaneseq  ;;  %s259_s17 = sshll.u32 %s445_s10, 7  ;;  %s131_s26 = scalar_lea.vmem [#allocation5], %s256_s22 }
  0x38   : > { %v134_v1 = vsel %vm133_vm0, %v132_v0, -inf  ;;  %s180_s27 = sshll.u32 %s131_s26, 4  ;;  %s547_s2 = scalar_lea.hbm %s592_s1, %s259_s17  ;;  %s549_s27 = int_to_ptr.vmem [resolvable:$true] %s180_s27 }
  0x39   : > { %135 = vmax.xlane.f32.xlu0 %v134_v1  ;;  %v159_v22 = vand.u32 127, %v158_v21  ;;  %s167_s10 = scalar_lea.sflag [#allocation4], %s529_s21  ;;  %s344_s3 = scalar_lea.vmem %s549_s27, 128 }
  0x3a   : > { %p345_p6 = scmp.ne.s32.totalorder %s549_s27, %s344_s3  ;;  %p601_p11 = scmp.ne.s32.totalorder %s596_s18, 0 }
  0x3b   : > { %vm160_vm1 = vcmp.eq.s32.totalorder %v159_v22, 0  ;;  %vm162_vm2 = vcmp.eq.s32.totalorder %v159_v22, 1  ;;  %s413_s4 = smov [#allocation5]  }
  0x3c   : > { %p346_p12 = pnand %p345_p6, %p601_p11  ;;  %s348_s5 = sshll.u32 %s413_s4, 4  ;;  %s349_s5 = int_to_ptr.vmem [resolvable:$false] %s348_s5 }
  0x3d   : > { %s350_s11 = scalar_lea.vmem %s349_s5, 256  ;;  %p351_p7 = scmp.lt.s32.totalorder %s549_s27, %s349_s5 }
  0x3e   : > { %p347_p13 = pneg %p346_p12  ;;  %p352_p10 = scmp.lt.s32.totalorder %s350_s11, %s344_s3 }
  0x40   : > { %p353_p2 = por %p352_p10, %p351_p7 }
  0x42   : > { %p354_p4 = pnand %p353_p2, %p347_p13 }
  0xc6   : > { %v136_v2 = vpop.xlane.xlu0 %135 }
  0xc7   : > { %v137_v3 = vrot.slane %v136_v2, 4 }
  0xc9   : > { %v138_v4 = vmax.f32 %v136_v2, %v137_v3 }
  0xcb   : > { %v139_v5 = vrot.slane %v138_v4, 2 }
  0xcd   : > { %v140_v6 = vmax.f32 %v138_v4, %v139_v5 }
  0xcf   : > { %v141_v7 = vrot.slane %v140_v6, 1 }
  0xd1   : > { %v142_v8 = vmax.f32 %v140_v6, %v141_v7 }
  0xd3   : > { %262 = vpush %v142_v8 }
 0x104   : > { %s263_s25 = spop %262 }
 0x105   : > { %v144_v9 = vstv %s263_s25 }
 0x106   : > { %v145_v10 = vsub.f32 %v132_v0, %v144_v9  ;;  %v161_v23 = vsel %vm160_vm1, %v144_v9, 0.0 }
 0x108   : > { %v146_v11 = vmul.f32 1.442695, %v145_v10 }
 0x10a   : > { %312 = vpow2.f32 %v146_v11 }
 0x114   : > { %v313_v12 = vpop.eup %312 }
 0x115   : > { %v148_v13 = vsel %vm133_vm0, %v313_v12, 0.0 }
 0x116   : > { %149 = vadd.xlane.f32.xlu0 %v148_v13 }
 0x1a3   : > { %v150_v14 = vpop.xlane.xlu0 %149 }
 0x1a4   : > { %v151_v15 = vrot.slane %v150_v14, 4 }
 0x1a6   : > { %v152_v16 = vadd.f32 %v151_v15, %v150_v14 }
 0x1a8   : > { %v153_v17 = vrot.slane %v152_v16, 2 }
 0x1aa   : > { %v154_v18 = vadd.f32 %v153_v17, %v152_v16 }
 0x1ac   : > { %v155_v19 = vrot.slane %v154_v18, 1 }
 0x1ae   : > { %v156_v20 = vadd.f32 %v155_v19, %v154_v18 }
 0x1b0   : > { %264 = vpush %v156_v20 }
 0x1e1   : > { %s265_s28 = spop %264 }
 0x1e2   : > { %v163_v24 = vstv %s265_s28 }
 0x1e3   : > { %v164_v25 = vsel %vm162_vm2, %v163_v24, %v161_v23 }
 0x1e4   : > { %165 = vst [vmem:[%s131_s26] sm:$0xff] %v164_v25 }
 0x1e5   : > { %357 = shalt.err (!%p354_p4)
}
 0x1e6   : > { %s358_s13 = scalar_lea.hbm %s547_s2, 128  ;;  %s362_s20 = scalar_lea.hbm %s592_s1, 256 }
 0x1e7   : > { %p359_p5 = scmp.ne.s32.totalorder %s547_s2, %s358_s13  ;;  %p363_p0 = scmp.lt.u32.totalorder %s547_s2, %s592_s1 }
 0x1e8   : > { %p364_p1 = scmp.lt.u32.totalorder %s362_s20, %s358_s13  ;;  %p366_p6 = scmp.lt.u32.totalorder %s358_s13, %s547_s2 }
 0x1e9   : > { %p360_p8 = pnand %p359_p5, %p601_p11 }
 0x1ea   : > { %p365_p3 = por %p364_p1, %p363_p0 }
 0x1eb   : > { %p361_p9 = pneg %p360_p8 }
 0x1ec   : > { %p367_p12 = por %p366_p6, %p365_p3 }
 0x1ee   : > { %p368_p13 = pnand %p367_p12, %p361_p9 }
 0x1f0   : > { %371 = shalt.err (!%p368_p13)
}
 0x1f1   : > { %268 = dma.vmem_to_hbm [thread:$0]  (%p601_p11), %s549_s27, 128, %s547_s2, %s167_s10  }
 0x1f2 PF: > { %s192_s23 = sand.u32 1, %s398_s6   ;;  %p602_p7 = scmp.ne.s32.totalorder %s597_s19, 0 }
 0x1f3   : > { %p603_p10 = scmp.ge.s32.totalorder %s410_s9, 2  ;;  %s193_s24 = scalar_lea.sflag [#allocation4], %s192_s23 }
 0x1f5   : > { %p275_p2 = pnand %p603_p10, %p602_p7 }
 0x1f7   : > { %393 = dma.done.wait (!%p275_p2), %s193_s24, 128  }
 0x1f8   : > { %395 = vsyncadd (!%p275_p2), %s193_s24, 4294967168  ;;  %p14_p4 = scmp.ge.s32.totalorder %s449_s12, 4   ;;  %s604_s6 = smov %s402_s7 }
 0x1f9   : > { %s605_s7 = smov %s406_s8  ;;  %s606_s8 = smov %s461_s15 }
 0x1fa   : > { %s607_s9 = smov %s449_s12  ;;  %16 = sbr.rel (!%p14_p4) target bundleno = 5 (0x5), region = 69 }
 0x201   :  { %198 = vsyncpa [#allocation3], 1 }
 0x202   :  { %200 = vsyncpa [#allocation3 + $0x1], 1 }
 0x203   :  { %201 = vsyncpa [#allocation4], 1 }
 0x204   :  { %203 = vsyncpa [#allocation4 + $0x1], 1 }

</bundles_post_ra>
